<compile_context>
chip_gen: v5e
topology: v5e:2x2
jax: 0.10.0
libtpu: 0.0.40
codegen_flags: <defaults>
</compile_context>

<pallas_src>
import functools

import jax
import jax.numpy as jnp
from jax.experimental import pallas as pl
from jax.experimental.pallas import tpu as pltpu

EPS = 1e-5


# --------------------------------------------------------------------------
# Fused kernel: the whole MLP in one invocation, everything VMEM-resident.
# --------------------------------------------------------------------------
def _fused_mlp_kernel(n_layers, *refs):
    """refs = (x, [wT, b, (g, beta)] * layers ..., o).  Python loop is static."""
    x_ref = refs[0]
    o_ref = refs[-1]
    p = refs[1:-1]

    h = x_ref[...].astype(jnp.float32)
    idx = 0
    for i in range(n_layers):
        is_last = (i == n_layers - 1)
        w_ref = p[idx]; idx += 1
        b_ref = p[idx]; idx += 1
        # Single full-K matmul on the MXU, f32 accumulation.
        h = jnp.dot(h, w_ref[...], preferred_element_type=jnp.float32)
        h = h + b_ref[...].astype(jnp.float32)
        if not is_last:
            g_ref = p[idx]; idx += 1
            beta_ref = p[idx]; idx += 1
            # BatchNorm1d, training mode: per-feature stats over the (fully
            # resident) batch dim, biased variance, eps=1e-5, affine.
            mean = jnp.mean(h, axis=0, keepdims=True)
            var = jnp.mean(jnp.square(h - mean), axis=0, keepdims=True)
            h = (h - mean) * jax.lax.rsqrt(var + EPS)
            h = h * g_ref[...].astype(jnp.float32) + beta_ref[...].astype(jnp.float32)
            h = jnp.maximum(h, 0.0)
    o_ref[...] = h.astype(o_ref.dtype)


# --------------------------------------------------------------------------
# Wrapper
# --------------------------------------------------------------------------
def mlp_forward(x, params):
    """Pallas forward of MLP.forward: flatten -> [Linear,BN,ReLU]* -> Linear -> reshape."""
    x_shape = x.shape
    h = x.reshape(x_shape[0], -1)
    B, D = h.shape
    n_layers = len(params["wT"])

    # Final layer must map back to the flattened input width for the reshape.
    assert params["wT"][-1].shape[1] == D, (
        "last layer out_features must equal flattened input dim for h.view(*x_shape)")

    inputs = [h]
    flops = 0
    transcendentals = 0
    param_bytes = 0
    for i in range(n_layers):
        wT, b = params["wT"][i], params["b"][i]
        K, N = wT.shape
        inputs += [wT, b]
        flops += 2 * B * K * N
        param_bytes += wT.size * wT.dtype.itemsize + b.size * b.dtype.itemsize
        if i < n_layers - 1:
            g, beta = params["g"][i], params["beta"][i]
            inputs += [g, beta]
            transcendentals += N  # rsqrt per feature
            param_bytes += g.size * g.dtype.itemsize + beta.size * beta.dtype.itemsize

    # Full-array, VMEM-resident specs (no grid, no pipelining machinery).
    vmem_spec = pl.BlockSpec(memory_space=pltpu.MemorySpace.VMEM)
    in_specs = [vmem_spec] * len(inputs)

    io_bytes = h.size * h.dtype.itemsize + B * D * h.dtype.itemsize
    total_bytes = param_bytes + io_bytes
    vmem_limit = int(min(max(4 * total_bytes + (4 << 20), 8 << 20), 32 << 20))

    out = pl.pallas_call(
        functools.partial(_fused_mlp_kernel, n_layers),
        out_shape=jax.ShapeDtypeStruct((B, D), h.dtype),
        in_specs=in_specs,
        out_specs=vmem_spec,
        compiler_params=pltpu.CompilerParams(vmem_limit_bytes=vmem_limit),
        cost_estimate=pl.CostEstimate(
            flops=flops,
            transcendentals=transcendentals,
            bytes_accessed=total_bytes,
        ),
    )(*inputs)
    return out.reshape(x_shape)


# --------------------------------------------------------------------------
# Params / reference
# --------------------------------------------------------------------------
def init_params(layer_dims, key):
    """Mirror nn.Linear default init; weights stored pre-transposed (in, out)."""
    keys = jax.random.split(key, 2 * len(layer_dims))
    wT, b, g, beta = [], [], [], []
    for i, (fan_in, fan_out) in enumerate(layer_dims):
        bound = 1.0 / (fan_in ** 0.5)
        w = jax.random.uniform(keys[2 * i], (fan_out, fan_in), jnp.float32,
                               -bound, bound)                   # PyTorch (out, in)
        bb = jax.random.uniform(keys[2 * i + 1], (1, fan_out), jnp.float32,
                                -bound, bound)
        wT.append(jnp.transpose(w))                             # (in, out), lane-dense
        b.append(bb)
        if i < len(layer_dims) - 1:
            g.append(jnp.ones((1, fan_out), jnp.float32))
            beta.append(jnp.zeros((1, fan_out), jnp.float32))
    return {"wT": wT, "b": b, "g": g, "beta": beta}


def reference(x, params):
    """Pure-JAX reference matching the PyTorch forward (BatchNorm1d in train mode)."""
    x_shape = x.shape
    h = x.reshape(x_shape[0], -1)
    n_layers = len(params["wT"])
    for i in range(n_layers - 1):
        h = h @ params["wT"][i] + params["b"][i]
        mean = jnp.mean(h, axis=0, keepdims=True)
        var = jnp.mean(jnp.square(h - mean), axis=0, keepdims=True)
        h = (h - mean) * jax.lax.rsqrt(var + EPS)
        h = h * params["g"][i] + params["beta"][i]
        h = jnp.maximum(h, 0.0)
    h = h @ params["wT"][-1] + params["b"][-1]
    return h.reshape(x_shape)


# --------------------------------------------------------------------------
# Main
# --------------------------------------------------------------------------
if __name__ == "__main__":
    key = jax.random.PRNGKey(0)
    kx, kp = jax.random.split(key)

    # x: (batch=8, channels=4, 16, 16) -> flattened feature dim D = 1024.
    # layers as passed to MLP([...]): (in_features, out_features) per nn.Linear.
    B, C, H, W = 8, 4, 16, 16
    D = C * H * W
    hidden = 128
    layer_dims = [(D, hidden), (hidden, hidden), (hidden, D)]

    x = jax.random.normal(kx, (B, C, H, W), jnp.float32)
    params = init_params(layer_dims, kp)

    out = jax.block_until_ready(mlp_forward(x, params))
    ref = jax.block_until_ready(reference(x, params))

    assert out.shape == ref.shape == (B, C, H, W)
    max_err = float(jnp.max(jnp.abs(out - ref)))
    if max_err > 1e-3:
        raise AssertionError(f"Pallas output mismatch, max abs err = {max_err}")

    print("KERNEL_OK")
</pallas_src>

<mosaic_0001>
module attributes {stable_mosaic.version = 11 : i64} {
  func.func @_fused_mlp_kernel(%arg0: memref<8x1024xf32, #tpu.memory_space<vmem>>, %arg1: memref<1024x128xf32, #tpu.memory_space<vmem>>, %arg2: memref<1x128xf32, #tpu.memory_space<vmem>>, %arg3: memref<1x128xf32, #tpu.memory_space<vmem>>, %arg4: memref<1x128xf32, #tpu.memory_space<vmem>>, %arg5: memref<128x128xf32, #tpu.memory_space<vmem>>, %arg6: memref<1x128xf32, #tpu.memory_space<vmem>>, %arg7: memref<1x128xf32, #tpu.memory_space<vmem>>, %arg8: memref<1x128xf32, #tpu.memory_space<vmem>>, %arg9: memref<128x1024xf32, #tpu.memory_space<vmem>>, %arg10: memref<1x1024xf32, #tpu.memory_space<vmem>>, %arg11: memref<8x1024xf32, #tpu.memory_space<vmem>>) attributes {dimension_semantics = [], scalar_prefetch = 0 : i64, scratch_operands = 0 : i64, tpu.core_type = #tpu.core_type<tc>} {
    %c0 = arith.constant 0 : index
    %c0_0 = arith.constant 0 : index
    %0 = vector.load %arg0[%c0, %c0_0] : memref<8x1024xf32, #tpu.memory_space<vmem>>, vector<8x1024xf32>
    %c0_1 = arith.constant 0 : index
    %c0_2 = arith.constant 0 : index
    %1 = vector.load %arg1[%c0_1, %c0_2] : memref<1024x128xf32, #tpu.memory_space<vmem>>, vector<1024x128xf32>
    %cst = arith.constant dense<0.000000e+00> : vector<8x128xf32>
    %2 = tpu.matmul %0, %1, %cst {dimension_numbers = #tpu.dot_dimension_numbers<[1], [0], [0], [1], [0, 0, 1, 1], [], []>} : vector<8x1024xf32>, vector<1024x128xf32>, vector<8x128xf32> -> vector<8x128xf32>
    %c0_3 = arith.constant 0 : index
    %c0_4 = arith.constant 0 : index
    %3 = vector.load %arg2[%c0_3, %c0_4] : memref<1x128xf32, #tpu.memory_space<vmem>>, vector<1x128xf32>
    %4 = vector.broadcast %3 : vector<1x128xf32> to vector<8x128xf32>
    %5 = arith.addf %2, %4 : vector<8x128xf32>
    %cst_5 = arith.constant dense<0.000000e+00> : vector<128xf32>
    %6 = vector.multi_reduction <add>, %5, %cst_5 [0] : vector<8x128xf32> to vector<128xf32>
    %7 = vector.shape_cast %6 : vector<128xf32> to vector<1x128xf32>
    %cst_6 = arith.constant 8.000000e+00 : f32
    %8 = vector.broadcast %cst_6 : f32 to vector<1x128xf32>
    %9 = arith.divf %7, %8 : vector<1x128xf32>
    %10 = vector.broadcast %9 : vector<1x128xf32> to vector<8x128xf32>
    %11 = arith.subf %5, %10 : vector<8x128xf32>
    %12 = arith.mulf %11, %11 : vector<8x128xf32>
    %cst_7 = arith.constant dense<0.000000e+00> : vector<128xf32>
    %13 = vector.multi_reduction <add>, %12, %cst_7 [0] : vector<8x128xf32> to vector<128xf32>
    %14 = vector.shape_cast %13 : vector<128xf32> to vector<1x128xf32>
    %cst_8 = arith.constant 8.000000e+00 : f32
    %15 = vector.broadcast %cst_8 : f32 to vector<1x128xf32>
    %16 = arith.divf %14, %15 : vector<1x128xf32>
    %17 = vector.broadcast %9 : vector<1x128xf32> to vector<8x128xf32>
    %18 = arith.subf %5, %17 : vector<8x128xf32>
    %cst_9 = arith.constant 9.99999974E-6 : f32
    %19 = vector.broadcast %cst_9 : f32 to vector<1x128xf32>
    %20 = arith.addf %16, %19 : vector<1x128xf32>
    %21 = math.rsqrt %20 : vector<1x128xf32>
    %22 = vector.broadcast %21 : vector<1x128xf32> to vector<8x128xf32>
    %23 = arith.mulf %18, %22 : vector<8x128xf32>
    %c0_10 = arith.constant 0 : index
    %c0_11 = arith.constant 0 : index
    %24 = vector.load %arg3[%c0_10, %c0_11] : memref<1x128xf32, #tpu.memory_space<vmem>>, vector<1x128xf32>
    %25 = vector.broadcast %24 : vector<1x128xf32> to vector<8x128xf32>
    %26 = arith.mulf %23, %25 : vector<8x128xf32>
    %c0_12 = arith.constant 0 : index
    %c0_13 = arith.constant 0 : index
    %27 = vector.load %arg4[%c0_12, %c0_13] : memref<1x128xf32, #tpu.memory_space<vmem>>, vector<1x128xf32>
    %28 = vector.broadcast %27 : vector<1x128xf32> to vector<8x128xf32>
    %29 = arith.addf %26, %28 : vector<8x128xf32>
    %cst_14 = arith.constant 0.000000e+00 : f32
    %30 = vector.broadcast %cst_14 : f32 to vector<8x128xf32>
    %31 = arith.maximumf %29, %30 : vector<8x128xf32>
    %c0_15 = arith.constant 0 : index
    %c0_16 = arith.constant 0 : index
    %32 = vector.load %arg5[%c0_15, %c0_16] : memref<128x128xf32, #tpu.memory_space<vmem>>, vector<128x128xf32>
    %cst_17 = arith.constant dense<0.000000e+00> : vector<8x128xf32>
    %33 = tpu.matmul %31, %32, %cst_17 {dimension_numbers = #tpu.dot_dimension_numbers<[1], [0], [0], [1], [0, 0, 1, 1], [], []>} : vector<8x128xf32>, vector<128x128xf32>, vector<8x128xf32> -> vector<8x128xf32>
    %c0_18 = arith.constant 0 : index
    %c0_19 = arith.constant 0 : index
    %34 = vector.load %arg6[%c0_18, %c0_19] : memref<1x128xf32, #tpu.memory_space<vmem>>, vector<1x128xf32>
    %35 = vector.broadcast %34 : vector<1x128xf32> to vector<8x128xf32>
    %36 = arith.addf %33, %35 : vector<8x128xf32>
    %cst_20 = arith.constant dense<0.000000e+00> : vector<128xf32>
    %37 = vector.multi_reduction <add>, %36, %cst_20 [0] : vector<8x128xf32> to vector<128xf32>
    %38 = vector.shape_cast %37 : vector<128xf32> to vector<1x128xf32>
    %cst_21 = arith.constant 8.000000e+00 : f32
    %39 = vector.broadcast %cst_21 : f32 to vector<1x128xf32>
    %40 = arith.divf %38, %39 : vector<1x128xf32>
    %41 = vector.broadcast %40 : vector<1x128xf32> to vector<8x128xf32>
    %42 = arith.subf %36, %41 : vector<8x128xf32>
    %43 = arith.mulf %42, %42 : vector<8x128xf32>
    %cst_22 = arith.constant dense<0.000000e+00> : vector<128xf32>
    %44 = vector.multi_reduction <add>, %43, %cst_22 [0] : vector<8x128xf32> to vector<128xf32>
    %45 = vector.shape_cast %44 : vector<128xf32> to vector<1x128xf32>
    %cst_23 = arith.constant 8.000000e+00 : f32
    %46 = vector.broadcast %cst_23 : f32 to vector<1x128xf32>
    %47 = arith.divf %45, %46 : vector<1x128xf32>
    %48 = vector.broadcast %40 : vector<1x128xf32> to vector<8x128xf32>
    %49 = arith.subf %36, %48 : vector<8x128xf32>
    %cst_24 = arith.constant 9.99999974E-6 : f32
    %50 = vector.broadcast %cst_24 : f32 to vector<1x128xf32>
    %51 = arith.addf %47, %50 : vector<1x128xf32>
    %52 = math.rsqrt %51 : vector<1x128xf32>
    %53 = vector.broadcast %52 : vector<1x128xf32> to vector<8x128xf32>
    %54 = arith.mulf %49, %53 : vector<8x128xf32>
    %c0_25 = arith.constant 0 : index
    %c0_26 = arith.constant 0 : index
    %55 = vector.load %arg7[%c0_25, %c0_26] : memref<1x128xf32, #tpu.memory_space<vmem>>, vector<1x128xf32>
    %56 = vector.broadcast %55 : vector<1x128xf32> to vector<8x128xf32>
    %57 = arith.mulf %54, %56 : vector<8x128xf32>
    %c0_27 = arith.constant 0 : index
    %c0_28 = arith.constant 0 : index
    %58 = vector.load %arg8[%c0_27, %c0_28] : memref<1x128xf32, #tpu.memory_space<vmem>>, vector<1x128xf32>
    %59 = vector.broadcast %58 : vector<1x128xf32> to vector<8x128xf32>
    %60 = arith.addf %57, %59 : vector<8x128xf32>
    %cst_29 = arith.constant 0.000000e+00 : f32
    %61 = vector.broadcast %cst_29 : f32 to vector<8x128xf32>
    %62 = arith.maximumf %60, %61 : vector<8x128xf32>
    %c0_30 = arith.constant 0 : index
    %c0_31 = arith.constant 0 : index
    %63 = vector.load %arg9[%c0_30, %c0_31] : memref<128x1024xf32, #tpu.memory_space<vmem>>, vector<128x1024xf32>
    %cst_32 = arith.constant dense<0.000000e+00> : vector<8x1024xf32>
    %64 = tpu.matmul %62, %63, %cst_32 {dimension_numbers = #tpu.dot_dimension_numbers<[1], [0], [0], [1], [0, 0, 1, 1], [], []>} : vector<8x128xf32>, vector<128x1024xf32>, vector<8x1024xf32> -> vector<8x1024xf32>
    %c0_33 = arith.constant 0 : index
    %c0_34 = arith.constant 0 : index
    %65 = vector.load %arg10[%c0_33, %c0_34] : memref<1x1024xf32, #tpu.memory_space<vmem>>, vector<1x1024xf32>
    %66 = vector.broadcast %65 : vector<1x1024xf32> to vector<8x1024xf32>
    %67 = arith.addf %64, %66 : vector<8x1024xf32>
    %c0_35 = arith.constant 0 : index
    %c0_36 = arith.constant 0 : index
    %68 = vector.load %arg11[%c0_35, %c0_36] : memref<8x1024xf32, #tpu.memory_space<vmem>>, vector<8x1024xf32>
    tpu.vector_store %arg11[%c0_35, %c0_36], %67 {strides = array<i32>} : memref<8x1024xf32, #tpu.memory_space<vmem>>, vector<8x1024xf32>,
    return
  }
}

</mosaic_0001>

<bundles_post_ra>
// kernel: tpu_custom_call.1
= control target key start
LH: loop header
LB: loop body
LE: loop exit
PB: predicated region body
PF: predicated region fallthrough
CT: control target
= control target key end

     0   :  { %16 = vsyncpa [#allocation3], 0  ;;  %s1339_s0 = inlined_call_operand.hbm [shape: f32[8,1024], index: 0, kind: input, shape index: {}]   ;;  %s1340_s1 = inlined_call_operand.hbm [shape: f32[1024,128], index: 1, kind: input, shape index: {}]   ;;  %s1341_s2 = inlined_call_operand.vmem [shape: f32[1,128], index: 2, kind: input, shape index: {}]   ;;  %s1342_s3 = inlined_call_operand.hbm [shape: f32[1,128], index: 3, kind: input, shape index: {}]   ;;  %s1343_s4 = inlined_call_operand.hbm [shape: f32[1,128], index: 4, kind: input, shape index: {}]   ;;  %s1344_s5 = inlined_call_operand.hbm [shape: f32[128,128], index: 5, kind: input, shape index: {}]   ;;  %s1345_s6 = inlined_call_operand.hbm [shape: f32[1,128], index: 6, kind: input, shape index: {}]   ;;  %s1346_s7 = inlined_call_operand.hbm [shape: f32[1,128], index: 7, kind: input, shape index: {}]   ;;  %s1347_s8 = inlined_call_operand.hbm [shape: f32[1,128], index: 8, kind: input, shape index: {}]   ;;  %s1348_s9 = inlined_call_operand.hbm [shape: f32[128,1024], index: 9, kind: input, shape index: {}]   ;;  %s1349_s10 = inlined_call_operand.vmem [shape: f32[1,1024], index: 10, kind: input, shape index: {}]   ;;  %s1350_s11 = inlined_call_operand.hbm [shape: f32[8,1024], index: 11, kind: output, shape index: {}]  }
   0x1   :  { %17 = vsyncpa [#allocation6], 0 }
   0x2   :  { %18 = vsyncpa [#allocation9], 0 }
   0x3   :  { %19 = vsyncpa [#allocation12], 0 }
   0x4   :  { %20 = vsyncpa [#allocation15], 0  ;;  %s37_s19 = sshll.u32 %s1340_s1, 4  ;;  %s38_s19 = int_to_ptr.hbm [resolvable:$true] %s37_s19 }
   0x5   :  { %21 = vsyncpa [#allocation4], 0  ;;  %s1206_s20 = smov [#allocation5]   ;;  %s64_s24 = sshll.u32 %s1343_s4, 4  ;;  %s65_s24 = int_to_ptr.hbm [resolvable:$true] %s64_s24 }
   0x6   :  { %s39_s21 = sshll.u32 %s1206_s20, 4  ;;  %s1207_s25 = smov 128   ;;  %s40_s21 = int_to_ptr.vmem [resolvable:$true] %s39_s21 }
   0x7   :  { %s1208_s26 = smov 8   ;;  %s1209_s27 = smov [#allocation8]  }
   0x8   :  { %45 = dma.hbm_to_vmem [thread:$0]  %s38_s19, 16384, %s40_s21, [#allocation6], %s1207_s25, %s1207_s25, %s1208_s26  }
   0x9   :  { %s66_s28 = sshll.u32 %s1209_s27, 4  ;;  %s88_s30 = sshll.u32 %s1345_s6, 4  ;;  %s67_s28 = int_to_ptr.vmem [resolvable:$true] %s66_s28  ;;  %s89_s30 = int_to_ptr.hbm [resolvable:$true] %s88_s30 }
   0xa   :  { %69 = dma.hbm_to_vmem [thread:$0]  %s65_s24, 16, %s67_s28, [#allocation9]  }
   0xb   :  { %s110_s4 = sshll.u32 %s1347_s8, 4  ;;  %s1210_s14 = smov [#allocation11]   ;;  %s111_s4 = int_to_ptr.hbm [resolvable:$true] %s110_s4 }
   0xc   :  { %s90_s15 = sshll.u32 %s1210_s14, 4  ;;  %s1211_s16 = smov [#allocation14]   ;;  %s91_s15 = int_to_ptr.vmem [resolvable:$true] %s90_s15 }
   0xd   :  { %93 = dma.hbm_to_vmem [thread:$0]  %s89_s30, 16, %s91_s15, [#allocation12]  }
   0xe   :  { %s112_s17 = sshll.u32 %s1211_s16, 4  ;;  %s27_s20 = sshll.u32 %s1339_s0, 4  ;;  %s113_s17 = int_to_ptr.vmem [resolvable:$true] %s112_s17  ;;  %s28_s20 = int_to_ptr.hbm [resolvable:$true] %s27_s20 }
   0xf   :  { %115 = dma.hbm_to_vmem [thread:$0]  %s111_s4, 16, %s113_s17, [#allocation15]  }
  0x10   :  { %s53_s22 = sshll.u32 %s1342_s3, 4  ;;  %s1212_s23 = smov [#allocation2]   ;;  %s54_s22 = int_to_ptr.hbm [resolvable:$true] %s53_s22 }
  0x11   :  { %s29_s8 = sshll.u32 %s1212_s23, 4  ;;  %s1213_s24 = smov [#allocation7]   ;;  %s30_s8 = int_to_ptr.vmem [resolvable:$true] %s29_s8 }
  0x12   :  { %32 = dma.hbm_to_vmem [thread:$0]  %s28_s20, 1024, %s30_s8, [#allocation3]  }
  0x13   :  { %s55_s27 = sshll.u32 %s1213_s24, 4  ;;  %s74_s1 = sshll.u32 %s1344_s5, 4  ;;  %s56_s27 = int_to_ptr.vmem [resolvable:$true] %s55_s27  ;;  %s75_s1 = int_to_ptr.hbm [resolvable:$true] %s74_s1 }
  0x14   :  { %58 = dma.hbm_to_vmem [thread:$0]  %s54_s22, 16, %s56_s27, [#allocation6]  }
  0x15   :  { %s99_s12 = sshll.u32 %s1346_s7, 4  ;;  %s1214_s13 = smov [#allocation10]   ;;  %s100_s12 = int_to_ptr.hbm [resolvable:$true] %s99_s12 }
  0x16   :  { %s76_s3 = sshll.u32 %s1214_s13, 4  ;;  %s1215_s4 = smov [#allocation13]   ;;  %s77_s3 = int_to_ptr.vmem [resolvable:$true] %s76_s3 }
  0x17   :  { %82 = dma.hbm_to_vmem [thread:$0]  %s75_s1, 2048, %s77_s3, [#allocation9], %s1207_s25, %s1207_s25, %s1208_s26  }
  0x18   :  { %s101_s14 = sshll.u32 %s1215_s4, 4  ;;  %s120_s5 = sshll.u32 %s1348_s9, 4  ;;  %s102_s14 = int_to_ptr.vmem [resolvable:$true] %s101_s14  ;;  %s121_s5 = int_to_ptr.hbm [resolvable:$true] %s120_s5 }
  0x19   :  { %104 = dma.hbm_to_vmem [thread:$0]  %s100_s12, 16, %s102_s14, [#allocation12]  }
  0x1a   :  { %s1216_s17 = smov [#allocation16]   ;;  %s1217_s7 = smov 1024  }
  0x1b   :  { %s122_s18 = sshll.u32 %s1216_s17, 4  ;;  %s1218_s19 = smov 64   ;;  %s123_s18 = int_to_ptr.vmem [resolvable:$true] %s122_s18 }
  0x1c   :  { %128 = dma.hbm_to_vmem [thread:$0]  %s121_s5, 16384, %s123_s18, [#allocation15], %s1217_s7, %s1217_s7, %s1218_s19  }
  0x1d   :  { %1194 = dma.done.wait [#allocation3], 1024  }
  0x1e   :  { %1195 = vsyncadd [#allocation3], 4294966272 }
  0x1f   :  { %1196 = dma.done.wait [#allocation6], 16400  }
  0x20   :  { %1197 = vsyncadd [#allocation6], 4294950896 }
  0x21   :  { %1198 = dma.done.wait [#allocation9], 2064  }
  0x22   :  { %1199 = vsyncadd [#allocation9], 4294965232 }
  0x23   :  { %1200 = dma.done.wait [#allocation12], 32  }
  0x24   :  { %1201 = vsyncadd [#allocation12], 4294967264 }
  0x25   :  { %1202 = dma.done.wait [#allocation15], 16400  }
  0x26   :  { %1203 = vsyncadd [#allocation15], 4294950896  ;;  %v222_v0 = vld [vmem:[#allocation5 + $0x178] sm:$0xff]  ;;  %v221_v2 = vld [vmem:[#allocation5 + $0x170] sm:$0xff]  ;;  %s913_s22 = sshll.u32 %s1350_s11, 4  ;;  %s914_s22 = int_to_ptr.hbm [resolvable:$true] %s913_s22 }
  0x27   :  { %v190_v1 = vld [vmem:[#allocation5 + $0x78] sm:$0xff]  ;;  %347 = vmatpush.msra.mxu2 %v222_v0  ;;  %v189_v4 = vld [vmem:[#allocation5 + $0x70] sm:$0xff]  ;;  %v220_v6 = vld [vmem:[#allocation5 + $0x168] sm:$0xff] }
  0x28   :  { %307 = vmatpush.msra.mxu0 %v190_v1  ;;  %v238_v3 = vld [vmem:[#allocation5 + $0x1f8] sm:$0xff]  ;;  %v237_v7 = vld [vmem:[#allocation5 + $0x1f0] sm:$0xff]  ;;  %v188_v8 = vld [vmem:[#allocation5 + $0x68] sm:$0xff] }
  0x29   :  { %v206_v5 = vld [vmem:[#allocation5 + $0xf8] sm:$0xff]  ;;  %367 = vmatpush.msra.mxu3 %v238_v3  ;;  %348 = vmatpush.msra.mxu2 %v221_v2  ;;  %v205_v9 = vld [vmem:[#allocation5 + $0xf0] sm:$0xff]  ;;  %v236_v10 = vld [vmem:[#allocation5 + $0x1e8] sm:$0xff] }
  0x2a   :  { %327 = vmatpush.msra.mxu1 %v206_v5  ;;  %308 = vmatpush.msra.mxu0 %v189_v4  ;;  %v219_v11 = vld [vmem:[#allocation5 + $0x160] sm:$0xff]  ;;  %v204_v13 = vld [vmem:[#allocation5 + $0xe8] sm:$0xff]  ;;  %v218_v16 = vld [vmem:[#allocation5 + $0x158] sm:$0xff] }
  0x2b   :  { %368 = vmatpush.msra.mxu3 %v237_v7  ;;  %v187_v12 = vld [vmem:[#allocation5 + $0x60] sm:$0xff]  ;;  %349 = vmatpush.msra.mxu2 %v220_v6  ;;  %v186_v17 = vld [vmem:[#allocation5 + $0x58] sm:$0xff]  ;;  %v217_v20 = vld [vmem:[#allocation5 + $0x150] sm:$0xff] }
  0x2c   :  { %328 = vmatpush.msra.mxu1 %v205_v9  ;;  %309 = vmatpush.msra.mxu0 %v188_v8  ;;  %v235_v14 = vld [vmem:[#allocation5 + $0x1e0] sm:$0xff]  ;;  %v234_v18 = vld [vmem:[#allocation5 + $0x1d8] sm:$0xff]  ;;  %v185_v21 = vld [vmem:[#allocation5 + $0x50] sm:$0xff] }
  0x2d   :  { %v203_v15 = vld [vmem:[#allocation5 + $0xe0] sm:$0xff]  ;;  %369 = vmatpush.msra.mxu3 %v236_v10  ;;  %350 = vmatpush.msra.mxu2 %v219_v11  ;;  %v202_v19 = vld [vmem:[#allocation5 + $0xd8] sm:$0xff]  ;;  %v233_v22 = vld [vmem:[#allocation5 + $0x1d0] sm:$0xff] }
  0x2e   :  { %329 = vmatpush.msra.mxu1 %v204_v13  ;;  %310 = vmatpush.msra.mxu0 %v187_v12  ;;  %v201_v23 = vld [vmem:[#allocation5 + $0xd0] sm:$0xff]  ;;  %v216_v24 = vld [vmem:[#allocation5 + $0x148] sm:$0xff]  ;;  %v215_v28 = vld [vmem:[#allocation5 + $0x140] sm:$0xff] }
  0x2f   :  { %370 = vmatpush.msra.mxu3 %v235_v14  ;;  %351 = vmatpush.msra.mxu2 %v218_v16  ;;  %v184_v25 = vld [vmem:[#allocation5 + $0x48] sm:$0xff]  ;;  %v183_v29 = vld [vmem:[#allocation5 + $0x40] sm:$0xff]  ;;  %v214_v32 = vld [vmem:[#allocation5 + $0x138] sm:$0xff] }
  0x30   :  { %330 = vmatpush.msra.mxu1 %v203_v15  ;;  %311 = vmatpush.msra.mxu0 %v186_v17  ;;  %v232_v26 = vld [vmem:[#allocation5 + $0x1c8] sm:$0xff]  ;;  %v231_v30 = vld [vmem:[#allocation5 + $0x1c0] sm:$0xff]  ;;  %v182_v33 = vld [vmem:[#allocation5 + $0x38] sm:$0xff] }
  0x31   :  { %371 = vmatpush.msra.mxu3 %v234_v18  ;;  %352 = vmatpush.msra.mxu2 %v217_v20  ;;  %v200_v27 = vld [vmem:[#allocation5 + $0xc8] sm:$0xff]  ;;  %v199_v31 = vld [vmem:[#allocation5 + $0xc0] sm:$0xff]  ;;  %v230_v34 = vld [vmem:[#allocation5 + $0x1b8] sm:$0xff] }
  0x32   :  { %331 = vmatpush.msra.mxu1 %v202_v19  ;;  %312 = vmatpush.msra.mxu0 %v185_v21  ;;  %v198_v35 = vld [vmem:[#allocation5 + $0xb8] sm:$0xff]  ;;  %v213_v36 = vld [vmem:[#allocation5 + $0x130] sm:$0xff]  ;;  %v212_v40 = vld [vmem:[#allocation5 + $0x128] sm:$0xff] }
  0x33   :  { %372 = vmatpush.msra.mxu3 %v233_v22  ;;  %353 = vmatpush.msra.mxu2 %v216_v24  ;;  %v181_v37 = vld [vmem:[#allocation5 + $0x30] sm:$0xff]  ;;  %v180_v41 = vld [vmem:[#allocation5 + $0x28] sm:$0xff]  ;;  %v211_v44 = vld [vmem:[#allocation5 + $0x120] sm:$0xff] }
  0x34   :  { %332 = vmatpush.msra.mxu1 %v201_v23  ;;  %313 = vmatpush.msra.mxu0 %v184_v25  ;;  %v229_v38 = vld [vmem:[#allocation5 + $0x1b0] sm:$0xff]  ;;  %v228_v42 = vld [vmem:[#allocation5 + $0x1a8] sm:$0xff]  ;;  %v179_v45 = vld [vmem:[#allocation5 + $0x20] sm:$0xff] }
  0x35   :  { %373 = vmatpush.msra.mxu3 %v232_v26  ;;  %354 = vmatpush.msra.mxu2 %v215_v28  ;;  %v197_v39 = vld [vmem:[#allocation5 + $0xb0] sm:$0xff]  ;;  %v196_v43 = vld [vmem:[#allocation5 + $0xa8] sm:$0xff]  ;;  %v227_v46 = vld [vmem:[#allocation5 + $0x1a0] sm:$0xff] }
  0x36   :  { %333 = vmatpush.msra.mxu1 %v200_v27  ;;  %314 = vmatpush.msra.mxu0 %v183_v29  ;;  %v195_v47 = vld [vmem:[#allocation5 + $0xa0] sm:$0xff]  ;;  %v210_v48 = vld [vmem:[#allocation5 + $0x118] sm:$0xff]  ;;  %v209_v52 = vld [vmem:[#allocation5 + $0x110] sm:$0xff] }
  0x37   :  { %374 = vmatpush.msra.mxu3 %v231_v30  ;;  %355 = vmatpush.msra.mxu2 %v214_v32  ;;  %v178_v49 = vld [vmem:[#allocation5 + $0x18] sm:$0xff]  ;;  %v177_v53 = vld [vmem:[#allocation5 + $0x10] sm:$0xff]  ;;  %v208_v56 = vld [vmem:[#allocation5 + $0x108] sm:$0xff] }
  0x38   :  { %334 = vmatpush.msra.mxu1 %v199_v31  ;;  %315 = vmatpush.msra.mxu0 %v182_v33  ;;  %v226_v50 = vld [vmem:[#allocation5 + $0x198] sm:$0xff]  ;;  %v225_v54 = vld [vmem:[#allocation5 + $0x190] sm:$0xff]  ;;  %v176_v57 = vld [vmem:[#allocation5 + $0x8] sm:$0xff] }
  0x39   :  { %375 = vmatpush.msra.mxu3 %v230_v34  ;;  %356 = vmatpush.msra.mxu2 %v213_v36  ;;  %v194_v51 = vld [vmem:[#allocation5 + $0x98] sm:$0xff]  ;;  %v193_v55 = vld [vmem:[#allocation5 + $0x90] sm:$0xff]  ;;  %v224_v58 = vld [vmem:[#allocation5 + $0x188] sm:$0xff] }
  0x3a   :  { %335 = vmatpush.msra.mxu1 %v198_v35  ;;  %316 = vmatpush.msra.mxu0 %v181_v37  ;;  %v192_v59 = vld [vmem:[#allocation5 + $0x88] sm:$0xff]  ;;  %v207_v60 = vld [vmem:[#allocation5 + $0x100] sm:$0xff]  ;;  %v286_v62 = vld [vmem:[#allocation5 + $0x378] sm:$0xff] }
  0x3b   :  { %376 = vmatpush.msra.mxu3 %v229_v38  ;;  %357 = vmatpush.msra.mxu2 %v212_v40  ;;  %v175_v61 = vld [vmem:[#allocation5] sm:$0xff]  ;;  %v254_v0 = vld [vmem:[#allocation5 + $0x278] sm:$0xff]  ;;  %v285_v2 = vld [vmem:[#allocation5 + $0x370] sm:$0xff] }
  0x3c   :  { %336 = vmatpush.msra.mxu1 %v197_v39  ;;  %317 = vmatpush.msra.mxu0 %v180_v41  ;;  %v223_v63 = vld [vmem:[#allocation5 + $0x180] sm:$0xff]  ;;  %v302_v1 = vld [vmem:[#allocation5 + $0x3f8] sm:$0xff]  ;;  %v253_v4 = vld [vmem:[#allocation5 + $0x270] sm:$0xff] }
  0x3d   :  { %377 = vmatpush.msra.mxu3 %v228_v42  ;;  %358 = vmatpush.msra.mxu2 %v211_v44  ;;  %v191_v3 = vld [vmem:[#allocation5 + $0x80] sm:$0xff]  ;;  %v270_v5 = vld [vmem:[#allocation5 + $0x2f8] sm:$0xff]  ;;  %v284_v6 = vld [vmem:[#allocation5 + $0x368] sm:$0xff] }
  0x3e   :  { %337 = vmatpush.msra.mxu1 %v196_v43  ;;  %318 = vmatpush.msra.mxu0 %v179_v45  ;;  %v301_v7 = vld [vmem:[#allocation5 + $0x3f0] sm:$0xff]  ;;  %v252_v8 = vld [vmem:[#allocation5 + $0x268] sm:$0xff]  ;;  %v283_v10 = vld [vmem:[#allocation5 + $0x360] sm:$0xff] }
  0x3f   :  { %378 = vmatpush.msra.mxu3 %v227_v46  ;;  %359 = vmatpush.msra.mxu2 %v210_v48  ;;  %v269_v9 = vld [vmem:[#allocation5 + $0x2f0] sm:$0xff]  ;;  %v300_v11 = vld [vmem:[#allocation5 + $0x3e8] sm:$0xff]  ;;  %v251_v12 = vld [vmem:[#allocation5 + $0x260] sm:$0xff] }
  0x40   :  { %338 = vmatpush.msra.mxu1 %v195_v47  ;;  %319 = vmatpush.msra.mxu0 %v178_v49  ;;  %v268_v13 = vld [vmem:[#allocation5 + $0x2e8] sm:$0xff]  ;;  %v282_v14 = vld [vmem:[#allocation5 + $0x358] sm:$0xff]  ;;  %v299_v15 = vld [vmem:[#allocation5 + $0x3e0] sm:$0xff] }
  0x41   :  { %379 = vmatpush.msra.mxu3 %v226_v50  ;;  %360 = vmatpush.msra.mxu2 %v209_v52  ;;  %v250_v16 = vld [vmem:[#allocation5 + $0x258] sm:$0xff]  ;;  %v267_v17 = vld [vmem:[#allocation5 + $0x2e0] sm:$0xff]  ;;  %v281_v18 = vld [vmem:[#allocation5 + $0x350] sm:$0xff] }
  0x42   :  { %339 = vmatpush.msra.mxu1 %v194_v51  ;;  %320 = vmatpush.msra.mxu0 %v177_v53  ;;  %v298_v19 = vld [vmem:[#allocation5 + $0x3d8] sm:$0xff]  ;;  %v249_v20 = vld [vmem:[#allocation5 + $0x250] sm:$0xff]  ;;  %v280_v22 = vld [vmem:[#allocation5 + $0x348] sm:$0xff] }
  0x43   :  { %380 = vmatpush.msra.mxu3 %v225_v54  ;;  %361 = vmatpush.msra.mxu2 %v208_v56  ;;  %v266_v21 = vld [vmem:[#allocation5 + $0x2d8] sm:$0xff]  ;;  %v297_v23 = vld [vmem:[#allocation5 + $0x3d0] sm:$0xff]  ;;  %v248_v24 = vld [vmem:[#allocation5 + $0x248] sm:$0xff] }
  0x44   :  { %340 = vmatpush.msra.mxu1 %v193_v55  ;;  %321 = vmatpush.msra.mxu0 %v176_v57  ;;  %v265_v25 = vld [vmem:[#allocation5 + $0x2d0] sm:$0xff]  ;;  %v279_v26 = vld [vmem:[#allocation5 + $0x340] sm:$0xff]  ;;  %v296_v27 = vld [vmem:[#allocation5 + $0x3c8] sm:$0xff] }
  0x45   :  { %381 = vmatpush.msra.mxu3 %v224_v58  ;;  %362 = vmatpush.msra.mxu2 %v207_v60  ;;  %v247_v28 = vld [vmem:[#allocation5 + $0x240] sm:$0xff]  ;;  %v264_v29 = vld [vmem:[#allocation5 + $0x2c8] sm:$0xff]  ;;  %v278_v30 = vld [vmem:[#allocation5 + $0x338] sm:$0xff] }
  0x46   :  { %341 = vmatpush.msra.mxu1 %v192_v59  ;;  %322 = vmatpush.msra.mxu0 %v175_v61  ;;  %v295_v31 = vld [vmem:[#allocation5 + $0x3c0] sm:$0xff]  ;;  %v246_v32 = vld [vmem:[#allocation5 + $0x238] sm:$0xff]  ;;  %v277_v34 = vld [vmem:[#allocation5 + $0x330] sm:$0xff] }
  0x47   :  { %427 = vmatpush.msrb.mxu2 %v286_v62  ;;  %382 = vmatpush.msra.mxu3 %v223_v63  ;;  %v263_v33 = vld [vmem:[#allocation5 + $0x2c0] sm:$0xff]  ;;  %v294_v35 = vld [vmem:[#allocation5 + $0x3b8] sm:$0xff]  ;;  %v245_v36 = vld [vmem:[#allocation5 + $0x230] sm:$0xff] }
  0x48   :  { %387 = vmatpush.msrb.mxu0 %v254_v0  ;;  %342 = vmatpush.msra.mxu1 %v191_v3  ;;  %v262_v37 = vld [vmem:[#allocation5 + $0x2b8] sm:$0xff]  ;;  %v276_v38 = vld [vmem:[#allocation5 + $0x328] sm:$0xff]  ;;  %v293_v39 = vld [vmem:[#allocation5 + $0x3b0] sm:$0xff] }
  0x49   :  { %447 = vmatpush.msrb.mxu3 %v302_v1  ;;  %428 = vmatpush.msrb.mxu2 %v285_v2  ;;  %v244_v40 = vld [vmem:[#allocation5 + $0x228] sm:$0xff]  ;;  %v261_v41 = vld [vmem:[#allocation5 + $0x2b0] sm:$0xff]  ;;  %v275_v42 = vld [vmem:[#allocation5 + $0x320] sm:$0xff] }
  0x4a   :  { %388 = vmatpush.msrb.mxu0 %v253_v4  ;;  %407 = vmatpush.msrb.mxu1 %v270_v5  ;;  %v292_v43 = vld [vmem:[#allocation5 + $0x3a8] sm:$0xff]  ;;  %v169_v44 = vld [vmem:[#allocation2 + $0x10] sm:$0xff]  ;;  %v243_v45 = vld [vmem:[#allocation5 + $0x220] sm:$0xff] }
  0x4b   :  { %429 = vmatpush.msrb.mxu2 %v284_v6  ;;  %448 = vmatpush.msrb.mxu3 %v301_v7  ;;  %v260_v46 = vld [vmem:[#allocation5 + $0x2a8] sm:$0xff]  ;;  %v274_v47 = vld [vmem:[#allocation5 + $0x318] sm:$0xff]  ;;  %v291_v48 = vld [vmem:[#allocation5 + $0x3a0] sm:$0xff] }
  0x4c   :  { %389 = vmatpush.msrb.mxu0 %v252_v8  ;;  %408 = vmatpush.msrb.mxu1 %v269_v9  ;;  %v167_v49 = vld [vmem:[#allocation2] sm:$0xff]  ;;  %v170_v50 = vld [vmem:[#allocation2 + $0x18] sm:$0xff]  ;;  %v273_v53 = vld [vmem:[#allocation5 + $0x310] sm:$0xff] }
  0x4d   :  { %430 = vmatpush.msrb.mxu2 %v283_v10  ;;  %449 = vmatpush.msrb.mxu3 %v300_v11  ;;  %v242_v51 = vld [vmem:[#allocation5 + $0x218] sm:$0xff]  ;;  %v259_v52 = vld [vmem:[#allocation5 + $0x2a0] sm:$0xff]  ;;  %v168_v55 = vld [vmem:[#allocation2 + $0x8] sm:$0xff] }
  0x4e   :  { %390 = vmatpush.msrb.mxu0 %v251_v12  ;;  %409 = vmatpush.msrb.mxu1 %v268_v13  ;;  %v290_v54 = vld [vmem:[#allocation5 + $0x398] sm:$0xff]  ;;  %v241_v56 = vld [vmem:[#allocation5 + $0x210] sm:$0xff]  ;;  %v272_v58 = vld [vmem:[#allocation5 + $0x308] sm:$0xff]  ;;  %v1219_v12 = vmov 8.0  }
  0x4f   :  { %431 = vmatpush.msrb.mxu2 %v282_v14  ;;  %450 = vmatpush.msrb.mxu3 %v299_v15  ;;  %v258_v57 = vld [vmem:[#allocation5 + $0x298] sm:$0xff]  ;;  %v289_v59 = vld [vmem:[#allocation5 + $0x390] sm:$0xff]  ;;  %v240_v60 = vld [vmem:[#allocation5 + $0x208] sm:$0xff]  ;;  %948 = vrcp.f32 %v1219_v12 }
  0x50   :  { %391 = vmatpush.msrb.mxu0 %v250_v16  ;;  %410 = vmatpush.msrb.mxu1 %v267_v17  ;;  %v257_v61 = vld [vmem:[#allocation5 + $0x290] sm:$0xff]  ;;  %v271_v62 = vld [vmem:[#allocation5 + $0x300] sm:$0xff]  ;;  %v288_v63 = vld [vmem:[#allocation5 + $0x388] sm:$0xff] }
  0x51   :  { %432 = vmatpush.msrb.mxu2 %v281_v18  ;;  %451 = vmatpush.msrb.mxu3 %v298_v19  ;;  %v173_v0 = vld [vmem:[#allocation2 + $0x30] sm:$0xff]  ;;  %v239_v1 = vld [vmem:[#allocation5 + $0x200] sm:$0xff]  ;;  %v256_v2 = vld [vmem:[#allocation5 + $0x288] sm:$0xff] }
  0x52   :  { %392 = vmatpush.msrb.mxu0 %v249_v20  ;;  %411 = vmatpush.msrb.mxu1 %v266_v21  ;;  %v287_v3 = vld [vmem:[#allocation5 + $0x380] sm:$0xff]  ;;  %v174_v5 = vld [vmem:[#allocation2 + $0x38] sm:$0xff]  ;;  %v172_v7 = vld [vmem:[#allocation2 + $0x28] sm:$0xff] }
  0x53   :  { %433 = vmatpush.msrb.mxu2 %v280_v22  ;;  %452 = vmatpush.msrb.mxu3 %v297_v23  ;;  %v171_v4 = vld [vmem:[#allocation2 + $0x20] sm:$0xff] }
  0x54   :  { %393 = vmatpush.msrb.mxu0 %v248_v24  ;;  %412 = vmatpush.msrb.mxu1 %v265_v25  ;;  %v255_v6 = vld [vmem:[#allocation5 + $0x280] sm:$0xff] }
  0x55   :  { %434 = vmatpush.msrb.mxu2 %v279_v26  ;;  %453 = vmatpush.msrb.mxu3 %v296_v27  ;;  %v942_v8 = vld [vmem:[%s1341_s2] ss:$0 sm:$0xff]  ;;  %v949_v18 = vpop.eup %948 }
  0x56   :  { %394 = vmatpush.msrb.mxu0 %v247_v28  ;;  %413 = vmatpush.msrb.mxu1 %v264_v29  ;;  %v474_v22 = vmul.f32 8.0, %v949_v18  ;;  %v528_v26 = vld [vmem:[#allocation10 + $0x78] sm:$0xff]  ;;  %vm478_vm0 = vweird.f32 %v949_v18 }
  0x57   :  { %435 = vmatpush.msrb.mxu2 %v278_v30  ;;  %454 = vmatpush.msrb.mxu3 %v295_v31  ;;  %v527_v30 = vld [vmem:[#allocation10 + $0x70] sm:$0xff] }
  0x58   :  { %395 = vmatpush.msrb.mxu0 %v246_v32  ;;  %414 = vmatpush.msrb.mxu1 %v263_v33  ;;  %v475_v28 = vsub.f32 1.0, %v474_v22  ;;  %v526_v32 = vld [vmem:[#allocation10 + $0x68] sm:$0xff] }
  0x59   :  { %436 = vmatpush.msrb.mxu2 %v277_v34  ;;  %455 = vmatpush.msrb.mxu3 %v294_v35  ;;  %v525_v35 = vld [vmem:[#allocation10 + $0x60] sm:$0xff] }
  0x5a   :  { %396 = vmatpush.msrb.mxu0 %v245_v36  ;;  %415 = vmatpush.msrb.mxu1 %v262_v37  ;;  %v476_v33 = vmul.f32 %v949_v18, %v475_v28  ;;  %v524_v37 = vld [vmem:[#allocation10 + $0x58] sm:$0xff]  ;;  %v696_v22 = vld [vmem:[#allocation16 + $0x340] sm:$0xff] }
  0x5b   :  { %437 = vmatpush.msrb.mxu2 %v276_v38  ;;  %456 = vmatpush.msrb.mxu3 %v293_v39  ;;  %v690_v28 = vld [vmem:[#allocation16 + $0x310] sm:$0xff] }
  0x5c   :  { %397 = vmatpush.msrb.mxu0 %v244_v40  ;;  %416 = vmatpush.msrb.mxu1 %v261_v41  ;;  %v477_v38 = vadd.f32 %v949_v18, %v476_v33  ;;  %v523_v40 = vld [vmem:[#allocation10 + $0x50] sm:$0xff]  ;;  %v683_v33 = vld [vmem:[#allocation16 + $0x2d8] sm:$0xff] }
  0x5d   :  { %438 = vmatpush.msrb.mxu2 %v275_v42  ;;  %457 = vmatpush.msrb.mxu3 %v292_v43  ;;  %v522_v42 = vld [vmem:[#allocation10 + $0x48] sm:$0xff] }
  0x5e   :  { %363 = vmatmul.f32.vlgmr.msra.gmra.mxu2 %v169_v44  ;;  %398 = vmatpush.msrb.mxu0 %v243_v45  ;;  %v1317_v43 = vsel %vm478_vm0, %v949_v18, %v477_v38  ;;  %v521_v45 = vld [vmem:[#allocation10 + $0x40] sm:$0xff] }
  0x5f   :  { %417 = vmatpush.msrb.mxu1 %v260_v46  ;;  %439 = vmatpush.msrb.mxu2 %v274_v47  ;;  %v520_v47 = vld [vmem:[#allocation10 + $0x38] sm:$0xff]  ;;  %v704_v18 = vld [vmem:[#allocation16 + $0x380] sm:$0xff] }
  0x60   :  { %458 = vmatpush.msrb.mxu3 %v291_v48  ;;  %323 = vmatmul.f32.vlgmr.msra.gmra.mxu0 %v167_v49  ;;  %v519_v49 = vld [vmem:[#allocation10 + $0x30] sm:$0xff]  ;;  %v664_v38 = vld [vmem:[#allocation16 + $0x240] sm:$0xff] }
  0x61   :  { %383 = vmatmul.f32.vlgmr.msra.gmra.mxu3 %v170_v50  ;;  %399 = vmatpush.msrb.mxu0 %v242_v51  ;;  %v518_v51 = vld [vmem:[#allocation10 + $0x28] sm:$0xff] }
  0x62   :  { %418 = vmatpush.msrb.mxu1 %v259_v52  ;;  %440 = vmatpush.msrb.mxu2 %v273_v53  ;;  %v517_v53 = vld [vmem:[#allocation10 + $0x20] sm:$0xff] }
  0x63   :  { %459 = vmatpush.msrb.mxu3 %v290_v54  ;;  %343 = vmatmul.f32.vlgmr.msra.gmra.mxu1 %v168_v55  ;;  %v516_v55 = vld [vmem:[#allocation10 + $0x18] sm:$0xff] }
  0x64   :  { %400 = vmatpush.msrb.mxu0 %v241_v56  ;;  %419 = vmatpush.msrb.mxu1 %v258_v57  ;;  %v515_v57 = vld [vmem:[#allocation10 + $0x10] sm:$0xff] }
  0x65   :  { %441 = vmatpush.msrb.mxu2 %v272_v58  ;;  %460 = vmatpush.msrb.mxu3 %v289_v59  ;;  %v514_v58 = vld [vmem:[#allocation10 + $0x8] sm:$0xff] }
  0x66   :  { %401 = vmatpush.msrb.mxu0 %v240_v60  ;;  %420 = vmatpush.msrb.mxu1 %v257_v61  ;;  %v513_v60 = vld [vmem:[#allocation10] sm:$0xff] }
  0x67   :  { %442 = vmatpush.msrb.mxu2 %v271_v62  ;;  %461 = vmatpush.msrb.mxu3 %v288_v63 }
  0x68   :  { %443 = vmatmul.f32.vlgmr.msrb.gmra.mxu2 %v173_v0  ;;  %402 = vmatpush.msrb.mxu0 %v239_v1 }
  0x69   :  { %421 = vmatpush.msrb.mxu1 %v256_v2  ;;  %462 = vmatpush.msrb.mxu3 %v287_v3 }
  0x6a   :  { %403 = vmatmul.f32.vlgmr.msrb.gmra.mxu0 %v171_v4  ;;  %463 = vmatmul.f32.vlgmr.msrb.gmra.mxu3 %v174_v5 }
  0x6b   :  { %422 = vmatpush.msrb.mxu1 %v255_v6  ;;  %533 = vmatpush.msra.mxu0 %v528_v26  ;;  %v688_v26 = vld [vmem:[#allocation16 + $0x300] sm:$0xff] }
  0x6c   :  { %423 = vmatmul.f32.vlgmr.msrb.gmra.mxu1 %v172_v7  ;;  %v943_v7 = vld [vmem:[#allocation7] ss:$0 sm:$0xff] }
  0x6d   :  { %534 = vmatpush.msra.mxu0 %v527_v30  ;;  %v680_v30 = vld [vmem:[#allocation16 + $0x2c0] sm:$0xff] }
  0x6f   :  { %535 = vmatpush.msra.mxu0 %v526_v32  ;;  %v682_v32 = vld [vmem:[#allocation16 + $0x2d0] sm:$0xff] }
  0x71   :  { %536 = vmatpush.msra.mxu0 %v525_v35  ;;  %v673_v35 = vld [vmem:[#allocation16 + $0x288] sm:$0xff] }
  0x73   :  { %537 = vmatpush.msra.mxu0 %v524_v37  ;;  %v675_v37 = vld [vmem:[#allocation16 + $0x298] sm:$0xff] }
  0x75   :  { %538 = vmatpush.msra.mxu0 %v523_v40  ;;  %v666_v40 = vld [vmem:[#allocation16 + $0x250] sm:$0xff] }
  0x77   :  { %539 = vmatpush.msra.mxu0 %v522_v42  ;;  %v656_v42 = vld [vmem:[#allocation16 + $0x200] sm:$0xff] }
  0x79   :  { %540 = vmatpush.msra.mxu0 %v521_v45  ;;  %v658_v45 = vld [vmem:[#allocation16 + $0x210] sm:$0xff] }
  0x7b   :  { %541 = vmatpush.msra.mxu0 %v520_v47  ;;  %v648_v47 = vld [vmem:[#allocation16 + $0x1c0] sm:$0xff] }
  0x7d   :  { %542 = vmatpush.msra.mxu0 %v519_v49  ;;  %v650_v49 = vld [vmem:[#allocation16 + $0x1d0] sm:$0xff] }
  0x7f   :  { %543 = vmatpush.msra.mxu0 %v518_v51  ;;  %v640_v51 = vld [vmem:[#allocation16 + $0x180] sm:$0xff] }
  0x81   :  { %544 = vmatpush.msra.mxu0 %v517_v53  ;;  %v642_v53 = vld [vmem:[#allocation16 + $0x190] sm:$0xff] }
  0x83   :  { %545 = vmatpush.msra.mxu0 %v516_v55  ;;  %v632_v55 = vld [vmem:[#allocation16 + $0x140] sm:$0xff] }
  0x85   :  { %546 = vmatpush.msra.mxu0 %v515_v57  ;;  %v634_v57 = vld [vmem:[#allocation16 + $0x150] sm:$0xff] }
  0x87   :  { %547 = vmatpush.msra.mxu0 %v514_v58  ;;  %v945_v58 = vld [vmem:[#allocation11] ss:$0 sm:$0xff] }
  0x89   :  { %548 = vmatpush.msra.mxu0 %v513_v60  ;;  %v624_v60 = vld [vmem:[#allocation16 + $0x100] sm:$0xff] }
  0xdd   :  { %v324_v9 = vpop.f32.mrf.mxu0 }
  0xde   :  { %v325_v10 = vadd.f32 %v942_v8, %v324_v9 }
  0xe0   :  { %v344_v11 = vpop.f32.mrf.mxu1 }
  0xe1   :  { %v345_v13 = vadd.f32 %v344_v11, %v325_v10  ;;  %v364_v14 = vpop.f32.mrf.mxu2  ;;  %v944_v10 = vld [vmem:[#allocation8] ss:$0 sm:$0xff] }
  0xe3   :  { %v365_v15 = vadd.f32 %v364_v14, %v345_v13  ;;  %v712_v14 = vld [vmem:[#allocation16 + $0x3c0] sm:$0xff] }
  0xe4   :  { %v384_v16 = vpop.f32.mrf.mxu3  ;;  %738 = vmatpush.msra.mxu1 %v712_v14 }
  0xe5   :  { %v385_v17 = vadd.f32 %v384_v16, %v365_v15  ;;  %v713_v15 = vld [vmem:[#allocation16 + $0x3c8] sm:$0xff]  ;;  %v714_v16 = vld [vmem:[#allocation16 + $0x3d0] sm:$0xff] }
  0xe6   :  { %758 = vmatpush.msra.mxu2 %v713_v15  ;;  %778 = vmatpush.msra.mxu3 %v714_v16  ;;  %v603_v15 = vld [vmem:[#allocation16 + $0x58] sm:$0xff]  ;;  %v592_v16 = vld [vmem:[#allocation16] sm:$0xff] }
  0xe7   :  { %v404_v19 = vpop.f32.mrf.mxu0  ;;  %739 = vmatpush.msra.mxu1 %v704_v18  ;;  %v594_v18 = vld [vmem:[#allocation16 + $0x10] sm:$0xff] }
  0xe8   :  { %v405_v20 = vadd.f32 %v404_v19, %v385_v17  ;;  %v715_v17 = vld [vmem:[#allocation16 + $0x3d8] sm:$0xff]  ;;  %v705_v19 = vld [vmem:[#allocation16 + $0x388] sm:$0xff] }
  0xe9   :  { %v424_v21 = vpop.f32.mrf.mxu1  ;;  %798 = vmatpush.msrb.mxu0 %v715_v17  ;;  %759 = vmatpush.msra.mxu2 %v705_v19  ;;  %v593_v17 = vld [vmem:[#allocation16 + $0x8] sm:$0xff] }
  0xea   :  { %v425_v23 = vadd.f32 %v424_v21, %v405_v20  ;;  %v706_v20 = vld [vmem:[#allocation16 + $0x390] sm:$0xff]  ;;  %v707_v21 = vld [vmem:[#allocation16 + $0x398] sm:$0xff]  ;;  %740 = vmatpush.msra.mxu1 %v696_v22  ;;  %v717_v22 = vld [vmem:[#allocation16 + $0x3e8] sm:$0xff] }
  0xeb   :  { %v444_v24 = vpop.f32.mrf.mxu2  ;;  %779 = vmatpush.msra.mxu3 %v706_v20  ;;  %799 = vmatpush.msrb.mxu0 %v707_v21  ;;  %v595_v20 = vld [vmem:[#allocation16 + $0x18] sm:$0xff]  ;;  %v716_v21 = vld [vmem:[#allocation16 + $0x3e0] sm:$0xff] }
  0xec   :  { %v445_v25 = vadd.f32 %v444_v24, %v425_v23  ;;  %v697_v23 = vld [vmem:[#allocation16 + $0x348] sm:$0xff]  ;;  %v698_v24 = vld [vmem:[#allocation16 + $0x350] sm:$0xff]  ;;  %741 = vmatpush.msra.mxu1 %v688_v26  ;;  %v708_v26 = vld [vmem:[#allocation16 + $0x3a0] sm:$0xff] }
  0xed   :  { %v464_v27 = vpop.f32.mrf.mxu3  ;;  %760 = vmatpush.msra.mxu2 %v697_v23  ;;  %780 = vmatpush.msra.mxu3 %v698_v24  ;;  %v718_v23 = vld [vmem:[#allocation16 + $0x3f0] sm:$0xff]  ;;  %v719_v24 = vld [vmem:[#allocation16 + $0x3f8] sm:$0xff] }
  0xee   :  { %v465_v29 = vadd.f32 %v464_v27, %v445_v25  ;;  %v699_v25 = vld [vmem:[#allocation16 + $0x358] sm:$0xff]  ;;  %v689_v27 = vld [vmem:[#allocation16 + $0x308] sm:$0xff]  ;;  %742 = vmatpush.msra.mxu1 %v680_v30 }
  0xef   :  { %800 = vmatpush.msrb.mxu0 %v699_v25  ;;  %761 = vmatpush.msra.mxu2 %v689_v27  ;;  %v709_v27 = vld [vmem:[#allocation16 + $0x3a8] sm:$0xff] }
  0xf0   :  { %v467_v31 = vrot.slane %v465_v29, 4  ;;  %781 = vmatpush.msra.mxu3 %v690_v28  ;;  %v710_v28 = vld [vmem:[#allocation16 + $0x3b0] sm:$0xff] }
  0xf2   :  { %v468_v34 = vadd.f32 %v467_v31, %v465_v29  ;;  %v681_v31 = vld [vmem:[#allocation16 + $0x2c8] sm:$0xff]  ;;  %782 = vmatpush.msra.mxu3 %v682_v32 }
  0xf3   :  { %762 = vmatpush.msra.mxu2 %v681_v31  ;;  %v700_v31 = vld [vmem:[#allocation16 + $0x360] sm:$0xff]  ;;  %v701_v32 = vld [vmem:[#allocation16 + $0x368] sm:$0xff] }
  0xf4   :  { %v469_v36 = vrot.slane %v468_v34, 2 }
  0xf5   :  { %763 = vmatpush.msra.mxu2 %v673_v35 }
  0xf6   :  { %v470_v39 = vadd.f32 %v469_v36, %v468_v34  ;;  %v672_v34 = vld [vmem:[#allocation16 + $0x280] sm:$0xff]  ;;  %v674_v36 = vld [vmem:[#allocation16 + $0x290] sm:$0xff] }
  0xf7   :  { %743 = vmatpush.msra.mxu1 %v672_v34  ;;  %783 = vmatpush.msra.mxu3 %v674_v36  ;;  %v703_v34 = vld [vmem:[#allocation16 + $0x378] sm:$0xff]  ;;  %v692_v36 = vld [vmem:[#allocation16 + $0x320] sm:$0xff] }
  0xf8   :  { %v471_v41 = vrot.slane %v470_v39, 1 }
  0xf9   :  { %744 = vmatpush.msra.mxu1 %v664_v38  ;;  %784 = vmatpush.msra.mxu3 %v666_v40  ;;  %v694_v38 = vld [vmem:[#allocation16 + $0x330] sm:$0xff] }
  0xfa   :  { %v472_v44 = vadd.f32 %v471_v41, %v470_v39  ;;  %v665_v39 = vld [vmem:[#allocation16 + $0x248] sm:$0xff]  ;;  %v667_v41 = vld [vmem:[#allocation16 + $0x258] sm:$0xff] }
  0xfb   :  { %764 = vmatpush.msra.mxu2 %v665_v39  ;;  %745 = vmatpush.msra.mxu1 %v656_v42  ;;  %v695_v39 = vld [vmem:[#allocation16 + $0x338] sm:$0xff]  ;;  %v685_v42 = vld [vmem:[#allocation16 + $0x2e8] sm:$0xff] }
  0xfc   :  { %v480_v46 = vmul.f32 %v1317_v43, %v472_v44  ;;  %v657_v44 = vld [vmem:[#allocation16 + $0x208] sm:$0xff]  ;;  %785 = vmatpush.msra.mxu3 %v658_v45  ;;  %v687_v45 = vld [vmem:[#allocation16 + $0x2f8] sm:$0xff] }
  0xfd   :  { %765 = vmatpush.msra.mxu2 %v657_v44  ;;  %746 = vmatpush.msra.mxu1 %v648_v47  ;;  %v686_v44 = vld [vmem:[#allocation16 + $0x2f0] sm:$0xff]  ;;  %v676_v47 = vld [vmem:[#allocation16 + $0x2a0] sm:$0xff] }
  0xfe   :  { %v481_v48 = vsub.f32 %v465_v29, %v480_v46  ;;  %v691_v29 = vld [vmem:[#allocation16 + $0x318] sm:$0xff]  ;;  %786 = vmatpush.msra.mxu3 %v650_v49  ;;  %v678_v49 = vld [vmem:[#allocation16 + $0x2b0] sm:$0xff] }
  0xff   :  { %801 = vmatpush.msrb.mxu0 %v691_v29  ;;  %v659_v46 = vld [vmem:[#allocation16 + $0x218] sm:$0xff]  ;;  %747 = vmatpush.msra.mxu1 %v640_v51 }
 0x100   :  { %v482_v50 = vmul.f32 %v481_v48, %v481_v48  ;;  %787 = vmatpush.msra.mxu3 %v642_v53  ;;  %v711_v29 = vld [vmem:[#allocation16 + $0x3b8] sm:$0xff]  ;;  %v669_v53 = vld [vmem:[#allocation16 + $0x268] sm:$0xff] }
 0x101   :  { %802 = vmatpush.msrb.mxu0 %v683_v33  ;;  %748 = vmatpush.msra.mxu1 %v632_v55  ;;  %v702_v33 = vld [vmem:[#allocation16 + $0x370] sm:$0xff]  ;;  %v671_v55 = vld [vmem:[#allocation16 + $0x278] sm:$0xff] }
 0x102   :  { %v483_v52 = vrot.slane %v482_v50, 4  ;;  %788 = vmatpush.msra.mxu3 %v634_v57  ;;  %v660_v57 = vld [vmem:[#allocation16 + $0x220] sm:$0xff] }
 0x103   :  { %803 = vmatpush.msrb.mxu0 %v675_v37  ;;  %749 = vmatpush.msra.mxu1 %v624_v60  ;;  %v693_v37 = vld [vmem:[#allocation16 + $0x328] sm:$0xff]  ;;  %v663_v60 = vld [vmem:[#allocation16 + $0x238] sm:$0xff] }
 0x104   :  { %v484_v54 = vadd.f32 %v483_v52, %v482_v50  ;;  %v651_v50 = vld [vmem:[#allocation16 + $0x1d8] sm:$0xff]  ;;  %v641_v52 = vld [vmem:[#allocation16 + $0x188] sm:$0xff] }
 0x105   :  { %804 = vmatpush.msrb.mxu0 %v667_v41  ;;  %v684_v41 = vld [vmem:[#allocation16 + $0x2e0] sm:$0xff] }
 0x106   :  { %v485_v56 = vrot.slane %v484_v54, 2 }
 0x107   :  { %805 = vmatpush.msrb.mxu0 %v659_v46 }
 0x108   :  { %v486_v59 = vadd.f32 %v485_v56, %v484_v54  ;;  %v643_v54 = vld [vmem:[#allocation16 + $0x198] sm:$0xff]  ;;  %v633_v56 = vld [vmem:[#allocation16 + $0x148] sm:$0xff] }
 0x109   :  { %806 = vmatpush.msrb.mxu0 %v651_v50  ;;  %v679_v50 = vld [vmem:[#allocation16 + $0x2b8] sm:$0xff] }
 0x10a   :  { %v487_v61 = vrot.slane %v486_v59, 1 }
 0x10b   :  { %807 = vmatpush.msrb.mxu0 %v643_v54  ;;  %v670_v54 = vld [vmem:[#allocation16 + $0x270] sm:$0xff] }
 0x10c   :  { %v488_v62 = vadd.f32 %v487_v61, %v486_v59  ;;  %v635_v59 = vld [vmem:[#allocation16 + $0x158] sm:$0xff]  ;;  %v625_v61 = vld [vmem:[#allocation16 + $0x108] sm:$0xff] }
 0x10d   :  { %808 = vmatpush.msrb.mxu0 %v635_v59  ;;  %v662_v59 = vld [vmem:[#allocation16 + $0x230] sm:$0xff] }
 0x10e   :  { %v489_v63 = vmul.f32 %v488_v62, %v1317_v43  ;;  %v626_v62 = vld [vmem:[#allocation16 + $0x110] sm:$0xff] }
 0x10f   :  { %789 = vmatpush.msra.mxu3 %v626_v62  ;;  %v652_v62 = vld [vmem:[#allocation16 + $0x1e0] sm:$0xff] }
 0x110   :  { %v490_v0 = vadd.f32 1e-05, %v489_v63  ;;  %v627_v63 = vld [vmem:[#allocation16 + $0x118] sm:$0xff] }
 0x111   :  { %809 = vmatpush.msrb.mxu0 %v627_v63  ;;  %v653_v63 = vld [vmem:[#allocation16 + $0x1e8] sm:$0xff] }
 0x112   :  { %950 = vrsqrt.f32 %v490_v0  ;;  %vm497_vm2 = vweird.f32 %v490_v0 }
 0x118   :  { %v951_v1 = vpop.eup %950 }
 0x119   :  { %v492_v2 = vmul.f32 %v951_v1, %v490_v0  ;;  %vm498_vm1 = vweird.f32 %v951_v1 }
 0x11a   :  { %vm499_vm3 = vmor %vm497_vm2, %vm498_vm1 }
 0x11b   :  { %v493_v3 = vmul.f32 %v951_v1, %v492_v2  ;;  %v617_v2 = vld [vmem:[#allocation16 + $0xc8] sm:$0xff] }
 0x11d   :  { %v494_v4 = vmul.f32 0.5, %v493_v3  ;;  %v618_v3 = vld [vmem:[#allocation16 + $0xd0] sm:$0xff] }
 0x11e   :  { %790 = vmatpush.msra.mxu3 %v618_v3  ;;  %v644_v3 = vld [vmem:[#allocation16 + $0x1a0] sm:$0xff] }
 0x11f   :  { %v495_v5 = vsub.f32 1.5, %v494_v4 }
 0x121   :  { %v496_v6 = vmul.f32 %v951_v1, %v495_v5  ;;  %v619_v5 = vld [vmem:[#allocation16 + $0xd8] sm:$0xff] }
 0x122   :  { %810 = vmatpush.msrb.mxu0 %v619_v5  ;;  %v646_v5 = vld [vmem:[#allocation16 + $0x1b0] sm:$0xff] }
 0x123   :  { %v500_v8 = vsel %vm499_vm3, %v951_v1, %v496_v6  ;;  %v616_v1 = vld [vmem:[#allocation16 + $0xc0] sm:$0xff] }
 0x124   :  { %v501_v9 = vmul.f32 %v500_v8, %v481_v48  ;;  %v649_v48 = vld [vmem:[#allocation16 + $0x1c8] sm:$0xff]  ;;  %750 = vmatpush.msra.mxu1 %v616_v1  ;;  %v608_v6 = vld [vmem:[#allocation16 + $0x80] sm:$0xff]  ;;  %v610_v8 = vld [vmem:[#allocation16 + $0x90] sm:$0xff] }
 0x125   :  { %766 = vmatpush.msra.mxu2 %v649_v48  ;;  %791 = vmatpush.msra.mxu3 %v610_v8  ;;  %v677_v48 = vld [vmem:[#allocation16 + $0x2a8] sm:$0xff]  ;;  %v655_v1 = vld [vmem:[#allocation16 + $0x1f8] sm:$0xff]  ;;  %v636_v8 = vld [vmem:[#allocation16 + $0x160] sm:$0xff] }
 0x126   :  { %v506_v11 = vmul.f32 %v943_v7, %v501_v9  ;;  %v609_v7 = vld [vmem:[#allocation16 + $0x88] sm:$0xff]  ;;  %751 = vmatpush.msra.mxu1 %v608_v6  ;;  %v647_v6 = vld [vmem:[#allocation16 + $0x1b8] sm:$0xff] }
 0x127   :  { %767 = vmatpush.msra.mxu2 %v641_v52  ;;  %v668_v52 = vld [vmem:[#allocation16 + $0x260] sm:$0xff] }
 0x128   :  { %v511_v12 = vadd.f32 %v944_v10, %v506_v11  ;;  %v611_v10 = vld [vmem:[#allocation16 + $0x98] sm:$0xff]  ;;  %v600_v11 = vld [vmem:[#allocation16 + $0x40] sm:$0xff] }
 0x129   :  { %768 = vmatpush.msra.mxu2 %v633_v56  ;;  %811 = vmatpush.msrb.mxu0 %v611_v10  ;;  %v638_v10 = vld [vmem:[#allocation16 + $0x170] sm:$0xff] }
 0x12a   :  { %v512_v13 = vmax.f32 %v511_v12, 0.0  ;;  %v601_v12 = vld [vmem:[#allocation16 + $0x48] sm:$0xff]  ;;  %752 = vmatpush.msra.mxu1 %v600_v11  ;;  %v639_v11 = vld [vmem:[#allocation16 + $0x178] sm:$0xff] }
 0x12b   :  { %769 = vmatpush.msra.mxu2 %v625_v61  ;;  %812 = vmatpush.msrb.mxu0 %v603_v15  ;;  %v630_v15 = vld [vmem:[#allocation16 + $0x130] sm:$0xff] }
 0x12c   :  { %549 = vmatmul.f32.vlgmr.msra.gmra.mxu0 %v512_v13  ;;  %v602_v13 = vld [vmem:[#allocation16 + $0x50] sm:$0xff]  ;;  %753 = vmatpush.msra.mxu1 %v592_v16  ;;  %v631_v16 = vld [vmem:[#allocation16 + $0x138] sm:$0xff] }
 0x12d   :  { %770 = vmatpush.msra.mxu2 %v617_v2  ;;  %792 = vmatpush.msra.mxu3 %v602_v13  ;;  %v628_v13 = vld [vmem:[#allocation16 + $0x120] sm:$0xff] }
 0x12e   :  { %813 = vmatpush.msrb.mxu0 %v595_v20  ;;  %818 = vmatpush.msrb.mxu1 %v716_v21  ;;  %v622_v20 = vld [vmem:[#allocation16 + $0xf0] sm:$0xff] }
 0x12f   :  { %771 = vmatpush.msra.mxu2 %v609_v7  ;;  %793 = vmatpush.msra.mxu3 %v594_v18  ;;  %v620_v18 = vld [vmem:[#allocation16 + $0xe0] sm:$0xff] }
 0x130   :  { %878 = vmatpush.msra.mxu0 %v719_v24  ;;  %819 = vmatpush.msrb.mxu1 %v708_v26  ;;  %v613_v24 = vld [vmem:[#allocation16 + $0xa8] sm:$0xff]  ;;  %v615_v26 = vld [vmem:[#allocation16 + $0xb8] sm:$0xff] }
 0x131   :  { %772 = vmatpush.msra.mxu2 %v601_v12  ;;  %858 = vmatpush.msrb.mxu3 %v718_v23  ;;  %v612_v23 = vld [vmem:[#allocation16 + $0xa0] sm:$0xff] }
 0x132   :  { %879 = vmatpush.msra.mxu0 %v711_v29  ;;  %820 = vmatpush.msrb.mxu1 %v700_v31  ;;  %v605_v29 = vld [vmem:[#allocation16 + $0x68] sm:$0xff]  ;;  %v607_v31 = vld [vmem:[#allocation16 + $0x78] sm:$0xff] }
 0x133   :  { %773 = vmatpush.msra.mxu2 %v593_v17  ;;  %859 = vmatpush.msrb.mxu3 %v710_v28 }
 0x134   :  { %880 = vmatpush.msra.mxu0 %v703_v34  ;;  %821 = vmatpush.msrb.mxu1 %v692_v36  ;;  %v599_v34 = vld [vmem:[#allocation16 + $0x38] sm:$0xff] }
 0x135   :  { %838 = vmatpush.msrb.mxu2 %v717_v22  ;;  %860 = vmatpush.msrb.mxu3 %v702_v33  ;;  %v623_v22 = vld [vmem:[#allocation16 + $0xf8] sm:$0xff]  ;;  %v598_v33 = vld [vmem:[#allocation16 + $0x30] sm:$0xff] }
 0x136   :  { %881 = vmatpush.msra.mxu0 %v695_v39  ;;  %822 = vmatpush.msrb.mxu1 %v684_v41  ;;  %v946_v41 = vld [vmem:[#allocation13] ss:$0 sm:$0xff] }
 0x137   :  { %839 = vmatpush.msrb.mxu2 %v709_v27  ;;  %861 = vmatpush.msrb.mxu3 %v694_v38  ;;  %v604_v27 = vld [vmem:[#allocation16 + $0x60] sm:$0xff] }
 0x138   :  { %882 = vmatpush.msra.mxu0 %v687_v45  ;;  %823 = vmatpush.msrb.mxu1 %v676_v47  ;;  %v947_v45 = vld [vmem:[#allocation14] ss:$0 sm:$0xff] }
 0x139   :  { %840 = vmatpush.msrb.mxu2 %v701_v32  ;;  %862 = vmatpush.msrb.mxu3 %v686_v44  ;;  %v596_v32 = vld [vmem:[#allocation16 + $0x20] sm:$0xff] }
 0x13a   :  { %883 = vmatpush.msra.mxu0 %v679_v50  ;;  %824 = vmatpush.msrb.mxu1 %v668_v52  ;;  %v720_v50 = vld [vmem:[%s1349_s10] sm:$0xff]  ;;  %s1220_s10 = smov [#allocation17]  }
 0x13b   :  { %841 = vmatpush.msrb.mxu2 %v693_v37  ;;  %863 = vmatpush.msrb.mxu3 %v678_v49  ;;  %v725_v52 = vperm.slane %v720_v50, 3  ;;  %s911_s20 = sshll.u32 %s1220_s10, 4  ;;  %s912_s20 = int_to_ptr.vmem [resolvable:$true] %s911_s20 }
 0x13c   :  { %884 = vmatpush.msra.mxu0 %v671_v55  ;;  %825 = vmatpush.msrb.mxu1 %v660_v57  ;;  %v724_v57 = vperm.slane %v720_v50, 2 }
 0x13d   :  { %842 = vmatpush.msrb.mxu2 %v685_v42  ;;  %864 = vmatpush.msrb.mxu3 %v670_v54 }
 0x13e   :  { %885 = vmatpush.msra.mxu0 %v663_v60  ;;  %826 = vmatpush.msrb.mxu1 %v652_v62  ;;  %v729_v60 = vperm.slane %v720_v50, 7 }
 0x13f   :  { %843 = vmatpush.msrb.mxu2 %v677_v48  ;;  %865 = vmatpush.msrb.mxu3 %v662_v59 }
 0x140   :  { %886 = vmatpush.msra.mxu0 %v655_v1  ;;  %827 = vmatpush.msrb.mxu1 %v644_v3 }
 0x141   :  { %844 = vmatpush.msrb.mxu2 %v669_v53 }
 0x142   :  { %887 = vmatpush.msra.mxu0 %v647_v6  ;;  %828 = vmatpush.msrb.mxu1 %v636_v8 }
 0x144   :  { %888 = vmatpush.msra.mxu0 %v639_v11  ;;  %829 = vmatpush.msrb.mxu1 %v628_v13 }
 0x146   :  { %889 = vmatpush.msra.mxu0 %v631_v16  ;;  %830 = vmatpush.msrb.mxu1 %v620_v18 }
 0x148   :  { %890 = vmatpush.msra.mxu0 %v623_v22  ;;  %831 = vmatpush.msrb.mxu1 %v612_v23 }
 0x14a   :  { %891 = vmatpush.msra.mxu0 %v615_v26  ;;  %832 = vmatpush.msrb.mxu1 %v604_v27 }
 0x14c   :  { %892 = vmatpush.msra.mxu0 %v607_v31  ;;  %833 = vmatpush.msrb.mxu1 %v596_v32 }
 0x14e   :  { %893 = vmatpush.msra.mxu0 %v599_v34 }
 0x1a9   :  { %v550_v0 = vpop.f32.mrf.mxu0 }
 0x1aa   :  { %v1321_v4 = vadd.f32 %v945_v58, %v550_v0  ;;  %v661_v58 = vld [vmem:[#allocation16 + $0x228] sm:$0xff]  ;;  %v654_v0 = vld [vmem:[#allocation16 + $0x1f0] sm:$0xff] }
 0x1ab   :  { %845 = vmatpush.msrb.mxu2 %v661_v58  ;;  %866 = vmatpush.msrb.mxu3 %v654_v0  ;;  %v726_v58 = vperm.slane %v720_v50, 4 }
 0x1ac   :  { %v553_v9 = vrot.slane %v1321_v4, 4 }
 0x1ad   :  { %846 = vmatpush.msrb.mxu2 %v653_v63  ;;  %867 = vmatpush.msrb.mxu3 %v646_v5  ;;  %v728_v5 = vperm.slane %v720_v50, 6 }
 0x1ae   :  { %v554_v14 = vadd.f32 %v553_v9, %v1321_v4  ;;  %v637_v9 = vld [vmem:[#allocation16 + $0x168] sm:$0xff] }
 0x1af   :  { %868 = vmatpush.msrb.mxu3 %v638_v10 }
 0x1b0   :  { %v555_v19 = vrot.slane %v554_v14, 2 }
 0x1b1   :  { %869 = vmatpush.msrb.mxu3 %v630_v15 }
 0x1b2   :  { %v556_v25 = vadd.f32 %v555_v19, %v554_v14  ;;  %v629_v14 = vld [vmem:[#allocation16 + $0x128] sm:$0xff] }
 0x1b3   :  { %v621_v19 = vld [vmem:[#allocation16 + $0xe8] sm:$0xff]  ;;  %870 = vmatpush.msrb.mxu3 %v622_v20 }
 0x1b4   :  { %v557_v30 = vrot.slane %v556_v25, 1 }
 0x1b6   :  { %v558_v35 = vadd.f32 %v557_v30, %v556_v25  ;;  %v614_v25 = vld [vmem:[#allocation16 + $0xb0] sm:$0xff] }
 0x1b7   :  { %v606_v30 = vld [vmem:[#allocation16 + $0x70] sm:$0xff]  ;;  %871 = vmatpush.msrb.mxu3 %v614_v25 }
 0x1b8   :  { %v559_v40 = vmul.f32 %v558_v35, %v1317_v43 }
 0x1b9   :  { %872 = vmatpush.msrb.mxu3 %v606_v30 }
 0x1ba   :  { %v1327_v46 = vsub.f32 %v1321_v4, %v559_v40  ;;  %v645_v4 = vld [vmem:[#allocation16 + $0x1a8] sm:$0xff] }
 0x1bb   :  { %847 = vmatpush.msrb.mxu2 %v645_v4  ;;  %873 = vmatpush.msrb.mxu3 %v598_v33  ;;  %v727_v4 = vperm.slane %v720_v50, 5 }
 0x1bc   :  { %v561_v51 = vmul.f32 %v1327_v46, %v1327_v46 }
 0x1bd   :  { %848 = vmatpush.msrb.mxu2 %v637_v9 }
 0x1be   :  { %v562_v56 = vrot.slane %v561_v51, 4 }
 0x1bf   :  { %849 = vmatpush.msrb.mxu2 %v629_v14 }
 0x1c0   :  { %v563_v61 = vadd.f32 %v562_v56, %v561_v51  ;;  %v722_v51 = vperm.slane %v720_v50, 0  ;;  %v723_v56 = vperm.slane %v720_v50, 1 }
 0x1c1   :  { %850 = vmatpush.msrb.mxu2 %v621_v19 }
 0x1c2   :  { %v564_v2 = vrot.slane %v563_v61, 2 }
 0x1c3   :  { %851 = vmatpush.msrb.mxu2 %v613_v24 }
 0x1c4   :  { %v565_v7 = vadd.f32 %v564_v2, %v563_v61 }
 0x1c5   :  { %852 = vmatpush.msrb.mxu2 %v605_v29 }
 0x1c6   :  { %v566_v12 = vrot.slane %v565_v7, 1 }
 0x1c8   :  { %v567_v17 = vadd.f32 %v566_v12, %v565_v7 }
 0x1ca   :  { %v568_v21 = vmul.f32 %v567_v17, %v1317_v43  ;;  %v597_v43 = vld [vmem:[#allocation16 + $0x28] sm:$0xff] }
 0x1cb   :  { %853 = vmatpush.msrb.mxu2 %v597_v43 }
 0x1cc   :  { %v569_v28 = vadd.f32 1e-05, %v568_v21 }
 0x1ce   :  { %952 = vrsqrt.f32 %v569_v28  ;;  %vm576_vm5 = vweird.f32 %v569_v28 }
 0x1d4   :  { %v953_v35 = vpop.eup %952 }
 0x1d5   :  { %v571_v36 = vmul.f32 %v953_v35, %v569_v28  ;;  %vm577_vm4 = vweird.f32 %v953_v35 }
 0x1d6   :  { %vm578_vm6 = vmor %vm576_vm5, %vm577_vm4 }
 0x1d7   :  { %v572_v37 = vmul.f32 %v953_v35, %v571_v36 }
 0x1d9   :  { %v573_v38 = vmul.f32 0.5, %v572_v37 }
 0x1db   :  { %v574_v39 = vsub.f32 1.5, %v573_v38 }
 0x1dd   :  { %v575_v40 = vmul.f32 %v953_v35, %v574_v39 }
 0x1df   :  { %v579_v42 = vsel %vm578_vm6, %v953_v35, %v575_v40 }
 0x1e0   :  { %v580_v44 = vmul.f32 %v579_v42, %v1327_v46 }
 0x1e2   :  { %v585_v47 = vmul.f32 %v946_v41, %v580_v44 }
 0x1e4   :  { %v590_v48 = vadd.f32 %v947_v45, %v585_v47 }
 0x1e6   :  { %v591_v49 = vmax.f32 %v590_v48, 0.0 }
 0x1e8   :  { %754 = vmatmul.f32.vlgmr.msra.gmra.mxu1 %v591_v49  ;;  %774 = vmatmul.f32.vlgmr.msra.gmra.mxu2 %v591_v49 }
 0x1e9   :  { %794 = vmatmul.f32.vlgmr.msra.gmra.mxu3 %v591_v49  ;;  %814 = vmatmul.f32.vlgmr.msrb.gmra.mxu0 %v591_v49 }
 0x1f0   :  { %834 = vmatmul.f32.vlgmr.msrb.gmra.mxu1 %v591_v49  ;;  %854 = vmatmul.f32.vlgmr.msrb.gmra.mxu2 %v591_v49 }
 0x1f1   :  { %874 = vmatmul.f32.vlgmr.msrb.gmra.mxu3 %v591_v49  ;;  %894 = vmatmul.f32.vlgmr.msra.gmra.mxu0 %v591_v49 }
 0x265   :  { %v755_v53 = vpop.f32.mrf.mxu1 }
 0x266   :  { %v756_v46 = vadd.f32 %v755_v53, %v722_v51  ;;  %v815_v54 = vpop.f32.mrf.mxu0 }
 0x267   :  { %v816_v55 = vadd.f32 %v815_v54, %v725_v52 }
 0x268   :  { %898 = vst [vmem:[#allocation17] sm:$0xff] %v756_v46 }
 0x269   :  { %901 = vst [vmem:[#allocation17 + $0x18] sm:$0xff] %v816_v55 }
 0x26b   :  { %v775_v59 = vpop.f32.mrf.mxu2 }
 0x26c   :  { %v776_v61 = vadd.f32 %v775_v59, %v723_v56  ;;  %v795_v62 = vpop.f32.mrf.mxu3 }
 0x26d   :  { %v796_v63 = vadd.f32 %v795_v62, %v724_v57  ;;  %v835_v0 = vpop.f32.mrf.mxu1 }
 0x26e   :  { %899 = vst [vmem:[#allocation17 + $0x8] sm:$0xff] %v776_v61  ;;  %v836_v1 = vadd.f32 %v835_v0, %v726_v58  ;;  %v895_v2 = vpop.f32.mrf.mxu0 }
 0x26f   :  { %900 = vst [vmem:[#allocation17 + $0x10] sm:$0xff] %v796_v63  ;;  %v896_v3 = vadd.f32 %v895_v2, %v729_v60 }
 0x270   :  { %902 = vst [vmem:[#allocation17 + $0x20] sm:$0xff] %v836_v1 }
 0x271   :  { %905 = vst [vmem:[#allocation17 + $0x38] sm:$0xff] %v896_v3 }
 0x273   :  { %v855_v6 = vpop.f32.mrf.mxu2 }
 0x274   :  { %v856_v7 = vadd.f32 %v855_v6, %v727_v4  ;;  %v875_v8 = vpop.f32.mrf.mxu3 }
 0x275   :  { %v876_v9 = vadd.f32 %v875_v8, %v728_v5 }
 0x276   :  { %903 = vst [vmem:[#allocation17 + $0x28] sm:$0xff] %v856_v7 }
 0x277   :  { %904 = vst [vmem:[#allocation17 + $0x30] sm:$0xff] %v876_v9 }
 0x278   :  { %916 = dma.vmem_to_hbm [thread:$0]  %s912_s20, 1024, %s914_s22, [#allocation4]  }
 0x279   :  { %1204 = dma.done.wait [#allocation4], 1024  }
 0x27a   :  { %1205 = vsyncadd [#allocation4], 4294966272 }
 0x27b   :  { %921 = vsyncpa [#allocation3], 1 }
 0x27c   :  { %922 = vsyncpa [#allocation6], 1 }
 0x27d   :  { %923 = vsyncpa [#allocation9], 1 }
 0x27e   :  { %924 = vsyncpa [#allocation12], 1 }
 0x27f   :  { %925 = vsyncpa [#allocation15], 1 }
 0x280   :  { %926 = vsyncpa [#allocation4], 1 }

</bundles_post_ra>
